<compile_context>
chip_gen: v7x
topology: tpu7x:2x2x1
jax: 0.10.0
libtpu: 0.0.40
codegen_flags: <defaults>
</compile_context>

<pallas_src>
import functools

import jax
import jax.numpy as jnp
from jax.experimental import pallas as pl
from jax.experimental.pallas import tpu as pltpu


LANE = 128
SUBLANE = 8


def _round_up(x, m):
    return (x + m - 1) // m * m


def _pick_n_blk(n, cap=8):
    """Largest divisor of n that is <= cap and keeps >= 2 grid steps."""
    cap = min(cap, max(1, n // 2))
    for cand in range(min(cap, n), 0, -1):
        if n % cand == 0:
            return cand
    return 1


# --------------------------- fused Pallas kernel -----------------------------

def _fused_conv_gap_head_kernel(x_ref, mask_ref, w_all_ref, b_conv_ref,
                                w_cls_t_ref, b_cls_ref, out_ref,
                                *, img_w, hw, inv_hw):
    """One grid step = one block of samples.

    x_ref      : [n_blk, C, P_buf] bf16  flattened row-padded image
                 (1 leading zero, zero row above/below, zero tail).
                 Pixel (r, c) lives at flat index 1 + (r+1)*W + c, so the
                 source of output position p for tap (ki, kj) is p + ki*W + kj.
    mask_ref   : [2, HW] bf16 {0,1}; row 0 = "w-1 in range", row 1 = "w+1 in range".
    w_all_ref  : [F_pad, 9*C] bf16  conv weight, taps ordered (ki, kj, c).
    b_conv_ref : [F_pad, 1] f32
    w_cls_t_ref: [NCLS_pad, F_pad] f32  (classifier weight, transposed)
    b_cls_ref  : [NCLS_pad, 1] f32
    out_ref    : [n_blk, NCLS_pad, 1] f32
    """
    n_blk = x_ref.shape[0]

    # Hoist invariant loads out of the per-sample loop.
    not_left = mask_ref[0:1, :]           # [1, HW] bf16
    not_right = mask_ref[1:2, :]          # [1, HW] bf16
    w_all = w_all_ref[...]                # [F_pad, 9C] bf16
    b_conv = b_conv_ref[...]              # [F_pad, 1]  f32
    w_cls_t = w_cls_t_ref[...]            # [NCLS_pad, F_pad] f32
    b_cls = b_cls_ref[...]                # [NCLS_pad, 1] f32

    for b in range(n_blk):                # static unroll over the sample block
        xb = x_ref[b]                     # [C, P_buf] bf16

        # Build the 9 shifted taps in VMEM (static lane-offset slices).
        pieces = []
        for ki in range(3):
            for kj in range(3):
                off = ki * img_w + kj
                piece = xb[:, off:off + hw]          # [C, HW] bf16
                if kj == 0:                          # left neighbor invalid at w == 0
                    piece = piece * not_left
                elif kj == 2:                        # right neighbor invalid at w == W-1
                    piece = piece * not_right
                pieces.append(piece)
        x_stack = jnp.concatenate(pieces, axis=0)    # [9C, HW] bf16

        # conv-as-matmul on the MXU: bf16 operands, f32 accumulation.
        h = jnp.dot(w_all, x_stack,
                    preferred_element_type=jnp.float32)      # [F_pad, HW]
        h = jnp.maximum(h + b_conv, 0.0)                      # bias + ReLU (f32)

        # Global average pool: one cross-lane reduce per sample.
        pooled = jnp.sum(h, axis=1, keepdims=True) * inv_hw   # [F_pad, 1]

        # Classifier head (the replaced nn.Linear), fused in-kernel.
        logits = jnp.dot(w_cls_t, pooled,
                         preferred_element_type=jnp.float32) + b_cls  # [NCLS_pad, 1]
        out_ref[b] = logits.astype(out_ref.dtype)


def fused_forward(xf, col_mask, w_all, b_conv_col, w_cls_t, b_cls_col,
                  *, img_w, hw, n_blk):
    """xf: [N, C, P_buf] bf16. Returns padded logits [N, NCLS_pad, 1] f32."""
    n, c, p_buf = xf.shape
    f_pad, kk = w_all.shape
    ncls_pad = w_cls_t.shape[0]
    assert n % n_blk == 0, (n, n_blk)
    grid = (n // n_blk,)

    flops = n * (2 * hw * kk * f_pad + 3 * hw * f_pad + 2 * f_pad * ncls_pad)
    bytes_accessed = (
        xf.size * xf.dtype.itemsize + col_mask.size * col_mask.dtype.itemsize
        + w_all.size * w_all.dtype.itemsize + b_conv_col.size * 4
        + w_cls_t.size * 4 + b_cls_col.size * 4 + n * ncls_pad * 4)

    kernel = functools.partial(_fused_conv_gap_head_kernel,
                               img_w=img_w, hw=hw, inv_hw=1.0 / hw)

    return pl.pallas_call(
        kernel,
        out_shape=jax.ShapeDtypeStruct((n, ncls_pad, 1), jnp.float32),
        grid=grid,
        in_specs=[
            pl.BlockSpec((n_blk, c, p_buf), lambda i: (i, 0, 0)),
            pl.BlockSpec((2, hw), lambda i: (0, 0)),
            pl.BlockSpec((f_pad, kk), lambda i: (0, 0)),
            pl.BlockSpec((f_pad, 1), lambda i: (0, 0)),
            pl.BlockSpec((ncls_pad, f_pad), lambda i: (0, 0)),
            pl.BlockSpec((ncls_pad, 1), lambda i: (0, 0)),
        ],
        out_specs=pl.BlockSpec((n_blk, ncls_pad, 1), lambda i: (i, 0, 0)),
        compiler_params=pltpu.CompilerParams(
            dimension_semantics=("parallel",),
            vmem_limit_bytes=32 * 1024 * 1024,   # fits v7x's 64 MiB with headroom
        ),
        cost_estimate=pl.CostEstimate(
            flops=flops, transcendentals=0, bytes_accessed=bytes_accessed),
    )(xf, col_mask, w_all, b_conv_col, w_cls_t, b_cls_col)


# -------------------------------- glue (JAX) ---------------------------------

@functools.partial(jax.jit,
                   static_argnames=("img_h", "img_w", "n_blk", "n_class"))
def _forward_impl(x, w_all, b_conv_col, w_cls_t, b_cls_col,
                  *, img_h, img_w, n_blk, n_class):
    n, c, h, w = x.shape
    hw = h * w
    # Flattened buffer length: needs max tap offset (2W+2) + HW, lane-aligned.
    p_buf = _round_up(hw + 2 * w + 2, LANE)

    xb = x.astype(jnp.bfloat16)                              # cast BEFORE padding
    xp = jnp.pad(xb, ((0, 0), (0, 0), (1, 1), (0, 0)))       # zero halo rows
    xf = xp.reshape(n, c, (h + 2) * w)
    xf = jnp.pad(xf, ((0, 0), (0, 0), (1, p_buf - (h + 2) * w - 1)))

    # Per-column validity masks for the left/right taps ('same' zero padding).
    cols = jnp.arange(hw, dtype=jnp.int32) % w
    col_mask = jnp.stack([cols >= 1, cols <= w - 2]).astype(jnp.bfloat16)

    out = fused_forward(xf, col_mask, w_all, b_conv_col, w_cls_t, b_cls_col,
                        img_w=w, hw=hw, n_blk=n_blk)
    return out[:, :n_class, 0]


class CassvaImgClassifierPallas:
    """Synthetic-backbone equivalent of CassvaImgClassifier (forward only)."""

    def __init__(self, in_ch=4, n_features=32, n_class=5,
                 key=jax.random.PRNGKey(0), n_blk=None):
        # TODO(synk): the real timm backbone (e.g. EfficientNet) is not
        # reproduced; a 3x3 conv + ReLU + GAP stands in for it, followed by
        # the replaced nn.Linear(n_features, n_class) classifier head.
        k1, k2, k3, k4 = jax.random.split(key, 4)
        self.in_ch = in_ch
        self.kk = 9 * in_ch
        self.n_features = n_features
        self.n_class = n_class
        self.n_blk = n_blk
        f_pad = _round_up(n_features, SUBLANE)
        ncls_pad = _round_up(n_class, SUBLANE)

        # f32 master weights (also used by the pure-JAX reference).
        self.w_conv_oihw = 0.05 * jax.random.normal(
            k1, (n_features, in_ch, 3, 3), jnp.float32)
        self.b_conv = 0.05 * jax.random.normal(k2, (n_features,), jnp.float32)
        self.w_cls = 0.05 * jax.random.normal(
            k3, (n_features, n_class), jnp.float32)
        self.b_cls = 0.05 * jax.random.normal(k4, (n_class,), jnp.float32)

        # Kernel-side forms.  Taps ordered (ki, kj, c) to match the kernel's
        # slice order; zero padding of F / n_class is numerically exact.
        w_all = self.w_conv_oihw.transpose(0, 2, 3, 1).reshape(n_features, self.kk)
        self.w_all = (jnp.zeros((f_pad, self.kk), jnp.float32)
                      .at[:n_features].set(w_all).astype(jnp.bfloat16))
        self.b_conv_col = (jnp.zeros((f_pad, 1), jnp.float32)
                           .at[:n_features, 0].set(self.b_conv))
        self.w_cls_t = (jnp.zeros((ncls_pad, f_pad), jnp.float32)
                        .at[:n_class, :n_features].set(self.w_cls.T))
        self.b_cls_col = (jnp.zeros((ncls_pad, 1), jnp.float32)
                          .at[:n_class, 0].set(self.b_cls))

    def __call__(self, x, n_blk=None):
        n, c, h, w = x.shape
        assert c == self.in_ch, (c, self.in_ch)
        n_blk = n_blk or self.n_blk or _pick_n_blk(n)
        return _forward_impl(x, self.w_all, self.b_conv_col,
                             self.w_cls_t, self.b_cls_col,
                             img_h=h, img_w=w, n_blk=n_blk,
                             n_class=self.n_class)


def _reference_forward(x, model):
    """Pure-JAX f32 reference of the same synthetic forward."""
    h = jax.lax.conv_general_dilated(
        x.astype(jnp.float32), model.w_conv_oihw, window_strides=(1, 1),
        padding="SAME", dimension_numbers=("NCHW", "OIHW", "NCHW"))
    h = jnp.maximum(h + model.b_conv.reshape(1, -1, 1, 1), 0.0)
    pooled = h.mean(axis=(2, 3))                                 # [N, F]
    return pooled @ model.w_cls + model.b_cls[None, :]


# ----------------------------------- main ------------------------------------

if __name__ == "__main__":
    key = jax.random.PRNGKey(0)
    x = jax.random.normal(key, (2, 4, 16, 16), jnp.float32)      # NCHW

    model = CassvaImgClassifierPallas(in_ch=4, n_features=32, n_class=5,
                                      key=jax.random.PRNGKey(0))

    # Default path: one sample per grid step (grid=(2,), pipelined, parallel).
    logits = model(x)
    jax.block_until_ready(logits)
    assert logits.shape == (2, 5), logits.shape
    assert logits.dtype == jnp.float32

    ref = _reference_forward(x, model)
    assert jnp.allclose(logits, ref, atol=1e-2, rtol=5e-2), (logits, ref)

    # Sample-blocked path (both samples in one grid step) for small H*W.
    logits_blk = model(x, n_blk=2)
    jax.block_until_ready(logits_blk)
    assert jnp.allclose(logits_blk, ref, atol=1e-2, rtol=5e-2), (logits_blk, ref)

    print("KERNEL_OK")
</pallas_src>

<mosaic_0001>
module attributes {stable_mosaic.version = 11 : i64} {
  func.func @_fused_conv_gap_head_kernel(%arg0: i32, %arg1: memref<1x4x384xbf16, #tpu.memory_space<vmem>>, %arg2: memref<2x256xbf16, #tpu.memory_space<vmem>>, %arg3: memref<32x36xbf16, #tpu.memory_space<vmem>>, %arg4: memref<32x1xf32, #tpu.memory_space<vmem>>, %arg5: memref<8x32xf32, #tpu.memory_space<vmem>>, %arg6: memref<8x1xf32, #tpu.memory_space<vmem>>, %arg7: memref<1x8x1xf32, #tpu.memory_space<vmem>>) attributes {dimension_semantics = [#tpu.dimension_semantics<parallel>], iteration_bounds = array<i64: 2>, scalar_prefetch = 0 : i64, scratch_operands = 0 : i64, tpu.core_type = #tpu.core_type<tc>, window_params = [{transform_indices = @transform_0, window_bounds = array<i64: 1, 4, 384>}, {pipeline_mode = #tpu.pipeline_mode<synchronous>, transform_indices = @transform_1, window_bounds = array<i64: 2, 256>}, {pipeline_mode = #tpu.pipeline_mode<synchronous>, transform_indices = @transform_2, window_bounds = array<i64: 32, 36>}, {pipeline_mode = #tpu.pipeline_mode<synchronous>, transform_indices = @transform_3, window_bounds = array<i64: 32, 1>}, {pipeline_mode = #tpu.pipeline_mode<synchronous>, transform_indices = @transform_4, window_bounds = array<i64: 8, 32>}, {pipeline_mode = #tpu.pipeline_mode<synchronous>, transform_indices = @transform_5, window_bounds = array<i64: 8, 1>}, {transform_indices = @transform_6, window_bounds = array<i64: 1, 8, 1>}]} {
    %c0 = arith.constant 0 : index
    %c0_0 = arith.constant 0 : index
    %0 = vector.load %arg2[%c0, %c0_0] : memref<2x256xbf16, #tpu.memory_space<vmem>>, vector<1x256xbf16>
    %c1 = arith.constant 1 : index
    %c0_1 = arith.constant 0 : index
    %1 = vector.load %arg2[%c1, %c0_1] : memref<2x256xbf16, #tpu.memory_space<vmem>>, vector<1x256xbf16>
    %c0_2 = arith.constant 0 : index
    %c0_3 = arith.constant 0 : index
    %2 = vector.load %arg3[%c0_2, %c0_3] : memref<32x36xbf16, #tpu.memory_space<vmem>>, vector<32x36xbf16>
    %c0_4 = arith.constant 0 : index
    %c0_5 = arith.constant 0 : index
    %3 = vector.load %arg4[%c0_4, %c0_5] : memref<32x1xf32, #tpu.memory_space<vmem>>, vector<32x1xf32>
    %c0_6 = arith.constant 0 : index
    %c0_7 = arith.constant 0 : index
    %4 = vector.load %arg5[%c0_6, %c0_7] : memref<8x32xf32, #tpu.memory_space<vmem>>, vector<8x32xf32>
    %c0_8 = arith.constant 0 : index
    %c0_9 = arith.constant 0 : index
    %5 = vector.load %arg6[%c0_8, %c0_9] : memref<8x1xf32, #tpu.memory_space<vmem>>, vector<8x1xf32>
    %c0_10 = arith.constant 0 : index
    %c0_11 = arith.constant 0 : index
    %c0_12 = arith.constant 0 : index
    %6 = vector.load %arg1[%c0_10, %c0_11, %c0_12] : memref<1x4x384xbf16, #tpu.memory_space<vmem>>, vector<1x4x384xbf16>
    %7 = vector.shape_cast %6 : vector<1x4x384xbf16> to vector<4x384xbf16>
    %8 = vector.extract_strided_slice %7 {offsets = [0, 0], sizes = [4, 256], strides = [1, 1]} : vector<4x384xbf16> to vector<4x256xbf16>
    %9 = vector.broadcast %0 : vector<1x256xbf16> to vector<4x256xbf16>
    %10 = arith.mulf %8, %9 : vector<4x256xbf16>
    %11 = vector.extract_strided_slice %7 {offsets = [0, 1], sizes = [4, 256], strides = [1, 1]} : vector<4x384xbf16> to vector<4x256xbf16>
    %12 = vector.extract_strided_slice %7 {offsets = [0, 2], sizes = [4, 256], strides = [1, 1]} : vector<4x384xbf16> to vector<4x256xbf16>
    %13 = vector.broadcast %1 : vector<1x256xbf16> to vector<4x256xbf16>
    %14 = arith.mulf %12, %13 : vector<4x256xbf16>
    %15 = vector.extract_strided_slice %7 {offsets = [0, 16], sizes = [4, 256], strides = [1, 1]} : vector<4x384xbf16> to vector<4x256xbf16>
    %16 = vector.broadcast %0 : vector<1x256xbf16> to vector<4x256xbf16>
    %17 = arith.mulf %15, %16 : vector<4x256xbf16>
    %18 = vector.extract_strided_slice %7 {offsets = [0, 17], sizes = [4, 256], strides = [1, 1]} : vector<4x384xbf16> to vector<4x256xbf16>
    %19 = vector.extract_strided_slice %7 {offsets = [0, 18], sizes = [4, 256], strides = [1, 1]} : vector<4x384xbf16> to vector<4x256xbf16>
    %20 = vector.broadcast %1 : vector<1x256xbf16> to vector<4x256xbf16>
    %21 = arith.mulf %19, %20 : vector<4x256xbf16>
    %22 = vector.extract_strided_slice %7 {offsets = [0, 32], sizes = [4, 256], strides = [1, 1]} : vector<4x384xbf16> to vector<4x256xbf16>
    %23 = vector.broadcast %0 : vector<1x256xbf16> to vector<4x256xbf16>
    %24 = arith.mulf %22, %23 : vector<4x256xbf16>
    %25 = vector.extract_strided_slice %7 {offsets = [0, 33], sizes = [4, 256], strides = [1, 1]} : vector<4x384xbf16> to vector<4x256xbf16>
    %26 = vector.extract_strided_slice %7 {offsets = [0, 34], sizes = [4, 256], strides = [1, 1]} : vector<4x384xbf16> to vector<4x256xbf16>
    %27 = vector.broadcast %1 : vector<1x256xbf16> to vector<4x256xbf16>
    %28 = arith.mulf %26, %27 : vector<4x256xbf16>
    %29 = tpu.concatenate %10, %11, %14, %17, %18, %21, %24, %25, %28 in 0 : vector<4x256xbf16>, vector<4x256xbf16>, vector<4x256xbf16>, vector<4x256xbf16>, vector<4x256xbf16>, vector<4x256xbf16>, vector<4x256xbf16>, vector<4x256xbf16>, vector<4x256xbf16> -> vector<36x256xbf16>
    %cst = arith.constant dense<0.000000e+00> : vector<32x256xf32>
    %30 = tpu.matmul %2, %29, %cst {dimension_numbers = #tpu.dot_dimension_numbers<[1], [0], [0], [1], [0, 0, 1, 1], [], []>} : vector<32x36xbf16>, vector<36x256xbf16>, vector<32x256xf32> -> vector<32x256xf32>
    %31 = vector.broadcast %3 : vector<32x1xf32> to vector<32x256xf32>
    %32 = arith.addf %30, %31 : vector<32x256xf32>
    %cst_13 = arith.constant 0.000000e+00 : f32
    %33 = vector.broadcast %cst_13 : f32 to vector<32x256xf32>
    %34 = arith.maximumf %32, %33 : vector<32x256xf32>
    %cst_14 = arith.constant dense<0.000000e+00> : vector<32xf32>
    %35 = vector.multi_reduction <add>, %34, %cst_14 [1] : vector<32x256xf32> to vector<32xf32>
    %36 = vector.shape_cast %35 : vector<32xf32> to vector<32x1xf32>
    %cst_15 = arith.constant 3.906250e-03 : f32
    %37 = vector.broadcast %cst_15 : f32 to vector<32x1xf32>
    %38 = arith.mulf %36, %37 : vector<32x1xf32>
    %cst_16 = arith.constant dense<0.000000e+00> : vector<8x1xf32>
    %39 = tpu.matmul %4, %38, %cst_16 {dimension_numbers = #tpu.dot_dimension_numbers<[1], [0], [0], [1], [0, 0, 1, 1], [], []>} : vector<8x32xf32>, vector<32x1xf32>, vector<8x1xf32> -> vector<8x1xf32>
    %40 = arith.addf %39, %5 : vector<8x1xf32>
    %c0_17 = arith.constant 0 : index
    %c0_18 = arith.constant 0 : index
    %c0_19 = arith.constant 0 : index
    %41 = vector.load %arg7[%c0_17, %c0_18, %c0_19] : memref<1x8x1xf32, #tpu.memory_space<vmem>>, vector<1x8x1xf32>
    %42 = vector.shape_cast %41 : vector<1x8x1xf32> to vector<8x1xf32>
    %43 = vector.shape_cast %40 : vector<8x1xf32> to vector<1x8x1xf32>
    tpu.vector_store %arg7[%c0_17, %c0_18, %c0_19], %43 {strides = array<i32>} : memref<1x8x1xf32, #tpu.memory_space<vmem>>, vector<1x8x1xf32>,
    return
  }
  func.func @transform_0(%arg0: i32) -> (i32, i32, i32) {
    %c0_i32 = arith.constant 0 : i32
    %c0_i32_0 = arith.constant 0 : i32
    %c0_i32_1 = arith.constant 0 : i32
    return %arg0, %c0_i32, %c0_i32_0 : i32, i32, i32
  }
  func.func @transform_1(%arg0: i32) -> (i32, i32) {
    %c0_i32 = arith.constant 0 : i32
    %c0_i32_0 = arith.constant 0 : i32
    %c0_i32_1 = arith.constant 0 : i32
    return %c0_i32, %c0_i32_0 : i32, i32
  }
  func.func @transform_2(%arg0: i32) -> (i32, i32) {
    %c0_i32 = arith.constant 0 : i32
    %c0_i32_0 = arith.constant 0 : i32
    %c0_i32_1 = arith.constant 0 : i32
    return %c0_i32, %c0_i32_0 : i32, i32
  }
  func.func @transform_3(%arg0: i32) -> (i32, i32) {
    %c0_i32 = arith.constant 0 : i32
    %c0_i32_0 = arith.constant 0 : i32
    %c0_i32_1 = arith.constant 0 : i32
    return %c0_i32, %c0_i32_0 : i32, i32
  }
  func.func @transform_4(%arg0: i32) -> (i32, i32) {
    %c0_i32 = arith.constant 0 : i32
    %c0_i32_0 = arith.constant 0 : i32
    %c0_i32_1 = arith.constant 0 : i32
    return %c0_i32, %c0_i32_0 : i32, i32
  }
  func.func @transform_5(%arg0: i32) -> (i32, i32) {
    %c0_i32 = arith.constant 0 : i32
    %c0_i32_0 = arith.constant 0 : i32
    %c0_i32_1 = arith.constant 0 : i32
    return %c0_i32, %c0_i32_0 : i32, i32
  }
  func.func @transform_6(%arg0: i32) -> (i32, i32, i32) {
    %c0_i32 = arith.constant 0 : i32
    %c0_i32_0 = arith.constant 0 : i32
    %c0_i32_1 = arith.constant 0 : i32
    return %arg0, %c0_i32, %c0_i32_0 : i32, i32, i32
  }
}

</mosaic_0001>

<bundles_post_ra>
// kernel: _forward_impl.1
= control target key start
LH: loop header
LB: loop body
LE: loop exit
PB: predicated region body
PF: predicated region fallthrough
CT: control target
= control target key end

     0   :  { %s992_s21 = smov 0   ;;  %s1123_s0 = inlined_call_operand.vmem [shape: bf16[2,4,384], index: 0, kind: input, shape index: {}]   ;;  %s1124_s1 = inlined_call_operand.vmem [shape: bf16[2,256], index: 1, kind: input, shape index: {}]   ;;  %s1125_s2 = inlined_call_operand.vmem [shape: bf16[32,36], index: 2, kind: input, shape index: {}]   ;;  %s1126_s3 = inlined_call_operand.vmem [shape: f32[32,1], index: 3, kind: input, shape index: {}]   ;;  %s1127_s4 = inlined_call_operand.vmem [shape: f32[8,32], index: 4, kind: input, shape index: {}]   ;;  %s1128_s5 = inlined_call_operand.vmem [shape: f32[8,1], index: 5, kind: input, shape index: {}]   ;;  %s1129_s6 = inlined_call_operand.vmem [shape: f32[2,8,1], index: 6, kind: output, shape index: {}]  }
   0x1 LB: > { %s852_s22 = sadd.s32 4294967295, %s936_s21   ;;  %p856_p0 = scmp.ge.s32.totalorder %s936_s21, 1  ;;  %s936_s21 = sphi %s992_s21, %s16_s21  }
   0x2   : > { %p212_p1 = scmp.lt.s32.totalorder %s936_s21, 3 }
   0x4   : > { %p213_p2 = pnand %p856_p0, %p212_p1 }
   0x5   : > { %v859_v0 = vld.sshfl [vmem:[%s1124_s1] sm:$0x11 pattern:$0x75316420] (!%p213_p2)  ;;  %v275_v1 = vlaneseq (!%p213_p2)  ;;  %v938_v2 = vmov (!%p213_p2), 1966171168  }
   0x6   : > { %216 = sbr.rel (%p213_p2) target bundleno = 895 (0x37f), region = 44  ;;  %v273_v3 = vunpack.c.l.s4 (!%p213_p2), %v938_v2  ;;  %p241_p3 = scmp.lt.s32.totalorder (!%p213_p2), %s852_s22, 1  ;;  %v271_v5 = vcombine.high (!%p213_p2), %v859_v0, %v859_v0  ;;  %v939_v7 = vmov (!%p213_p2), 1983009808   ;;  %vm339_vm0 = vcmask (!%p213_p2), 15360  }
   0x7   : > { %v276_v4 = vshrl.u32 (!%p213_p2), %v275_v1, 7  ;;  %v304_v8 = vunpack.c.l.s4 (!%p213_p2), %v939_v7  ;;  %s940_s29 = smov (!%p213_p2), 18   ;;  %s941_s30 = smov (!%p213_p2), 2   ;;  %vm360_vm1 = vcmask (!%p213_p2), 261120   ;;  %vm346_vm2 = vcmask (!%p213_p2), 130048  }
   0x8   : > { %v274_v6 = vunpack.c.0.s8 (!%p213_p2), %v273_v3  ;;  %s942_s7 = smov (!%p213_p2), 32   ;;  %s943_s8 = smov (!%p213_p2), 16   ;;  %vm353_vm3 = vcmask (!%p213_p2), 146432   ;;  %vm367_vm4 = vcmask (!%p213_p2), 277504   ;;  %vm403_vm5 = vcmask (!%p213_p2), 1039360  }
   0x9   : > { %v291_v12 = vsub.s32 (!%p213_p2), 0, %v276_v4  ;;  %v305_v13 = vunpack.c.0.s8 (!%p213_p2), %v304_v8  ;;  %s944_s9 = smov (!%p213_p2), 34   ;;  %s945_s10 = smov (!%p213_p2), 127   ;;  %vm430_vm6 = vcmask (!%p213_p2), 1031168   ;;  %vm568_vm7 = vcmask (!%p213_p2), 1041408  }
   0xa   : > { %v277_v9 = vsub.s32 (!%p213_p2), %v274_v6, %v276_v4  ;;  %s946_s11 = smov (!%p213_p2), 111   ;;  %s947_s12 = smov (!%p213_p2), 96   ;;  %vm575_vm8 = vcmask (!%p213_p2), 1043456   ;;  %vm475_vm9 = vcmask (!%p213_p2), 908288   ;;  %vm457_vm10 = vcmask (!%p213_p2), 916480  }
   0xb   : > { %v1011_v23 = vsub.s32 (!%p213_p2), %v305_v13, %v276_v4  ;;  %s948_s13 = smov (!%p213_p2), 112   ;;  %s949_s14 = smov (!%p213_p2), 126   ;;  %vm528_vm11 = vcmask (!%p213_p2), 785408   ;;  %vm501_vm12 = vcmask (!%p213_p2), 900096   ;;  %vm580_vm13 = vcmask (!%p213_p2), 1045504  }
   0xc   : > { %v278_v10 = vrot.slane (!%p213_p2), %v859_v0, %v277_v9  ;;  %v285_v11 = vrot.slane (!%p213_p2), %v271_v5, %v277_v9  ;;  %s950_s15 = smov (!%p213_p2), 110   ;;  %s951_s16 = smov (!%p213_p2), 95   ;;  %vm539_vm14 = vcmask (!%p213_p2), 777216   ;;  %vm565_vm15 = vcmask (!%p213_p2), 769024  }
   0xd   : > { %s1131_s22 = smov (!%p241_p3, %s852_s22), 1  ;;  %s953_s17 = smov 94  }
   0xe   : > { %s896_s25 = smul.u32 6, %s1131_s22  ;;  %v312_v14 = vshrl.u32 %v278_v10, 16  ;;  %v319_v15 = vshrl.u32 %v285_v11, 16  ;;  %v287_v16 = vpack.i.b16 %v278_v10, %v278_v10  ;;  %v294_v17 = vpack.i.b16 %v285_v11, %v285_v11 }
  0x10   : > { %s245_s28 = scalar_lea.vmem %s1123_s0, %s896_s25  ;;  %v313_v18 = vpack.i.b16 %v312_v14, %v312_v14  ;;  %v320_v19 = vpack.i.b16 %v319_v15, %v319_v15  ;;  %v292_v20 = vrot.slane %v287_v16, %v291_v12  ;;  %v299_v21 = vrot.slane %v294_v17, %v291_v12 }
  0x11   : > { %v1009_v22 = vld [vmem:[%s245_s28] sm:$0x3f]  ;;  %v952_v14 = vmov 0  }
  0x12   : > { %v318_v24 = vrot.slane %v313_v18, %v291_v12  ;;  %v325_v25 = vrot.slane %v320_v19, %v291_v12  ;;  %v302_v27 = vcombine.low %v292_v20, %v299_v21  ;;  %v381_v28 = vcombine.low %v1009_v22, %v1009_v22  ;;  %678 = vmatprep.mubr.bf16.mxu0 %v952_v14  ;;  %v257_v19 = vld [vmem:[%s1126_s3 + $0x8] sm:$0xff]  ;;  %v256_v20 = vld [vmem:[%s1126_s3] sm:$0xff]  ;;  %v258_v21 = vld [vmem:[%s1126_s3 + $0x10] sm:$0xff] }
  0x13   : > { %v1028_v33 = vrot.slane %v1009_v22, %v1011_v23  ;;  %v460_v34 = vcombine.high %v1009_v22, %v1009_v22  ;;  %688 = vmatprep.mubr.bf16.mxu1 %v952_v14  ;;  %924 = vset.pattern.permute.xlu1 %v952_v14 }
  0x14   : > { %v328_v26 = vcombine.low %v318_v24, %v325_v25  ;;  %v1017_v30 = vrot.slane %v302_v27, %v1011_v23  ;;  %v1020_v31 = vrot.slane %v381_v28, %v1011_v23  ;;  %925 = vset.pattern.permute.xlu0 %v952_v14  ;;  %v259_v24 = vld [vmem:[%s1126_s3 + $0x18] sm:$0xff] }
  0x15   : > { %v468_v35 = vcombine.high %v1028_v33, %v1028_v33  ;;  %v467_v36 = vrot.slane %v460_v34, %v1011_v23  ;;  %v532_v7 = vcombine.low %v1028_v33, %v1028_v33 }
  0x16   : > { %v335_v29 = vrot.slane %v328_v26, %v1011_v23  ;;  %v396_v32 = vcombine.high %v1020_v31, %v1020_v31  ;;  %v531_v16 = vcombine.low %v1020_v31, %v1020_v31 }
  0x18   : > { %350 = vrot.lane.b32.xlu1 %v335_v29, %s940_s29  ;;  %336 = vrot.lane.b32.xlu0 %v335_v29, %s941_s30 }
  0x1c   : > { %357 = vrot.lane.b32.xlu1 %v1017_v30, %s942_s7  ;;  %343 = vrot.lane.b32.xlu0 %v1017_v30, %s943_s8 }
  0x20   : > { %364 = vrot.lane.b32.xlu0 %v335_v29, %s944_s9  ;;  %399 = vrot.lane.b32.xlu1 %v396_v32, %s945_s10 }
  0x24   : > { %401 = vrot.lane.b32.xlu0 %v1028_v33, %s945_s10  ;;  %397 = vrot.lane.b32.xlu1 %v1020_v31, %s945_s10  ;;  %s858_s10 = sshll.u32 %s1131_s22, 3 }
  0x28   : > { %471 = vrot.lane.b32.xlu0 %v468_v35, %s946_s11  ;;  %473 = vrot.lane.b32.xlu1 %v467_v36, %s946_s11 }
  0x2c   : > { %469 = vrot.lane.b32.xlu0 %v1028_v33, %s946_s11 }
  0x8a   : > { %v351_v37 = vpop.permute.xlu1 %350  ;;  %v337_v38 = vpop.permute.xlu0 %336 }
  0x8b   : > { %v338_v39 = vrot.slane %v337_v38, 6  ;;  %v352_v42 = vrot.slane %v351_v37, 6 }
  0x8d   : > { %v340_v45 = vsel %vm339_vm0, %v338_v39, %v337_v38  ;;  %v354_v50 = vsel %vm353_vm3, %v352_v42, %v351_v37  ;;  %v311_v38 = vmul.bf16 %v1017_v30, %v1009_v22  ;;  %vm633_vm0 = vcmask 293888  }
  0x8e   : > { %v358_v40 = vpop.permute.xlu1 %357  ;;  %v344_v41 = vpop.permute.xlu0 %343  ;;  %v342_v51 = vmul.bf16 %v340_v45, %v1009_v22  ;;  %v356_v54 = vmul.bf16 %v354_v50, %v1009_v22  ;;  %vm797_vm3 = vcmask 7168  }
  0x8f   : > { %v359_v43 = vrot.slane %v358_v40, 6  ;;  %v345_v44 = vrot.slane %v344_v41, 6 }
  0x90   : > { %v414_v56 = vrot.slane %v342_v51, %v1011_v23  ;;  %v493_v58 = vrot.slane %v356_v54, %v1011_v23  ;;  %v479_v60 = vcombine.low %v356_v54, %v356_v54  ;;  %v407_v1 = vcombine.high %v342_v51, %v342_v51 }
  0x91   : > { %v361_v46 = vsel %vm360_vm1, %v359_v43, %v358_v40  ;;  %v347_v47 = vsel %vm346_vm2, %v345_v44, %v344_v41  ;;  %v378_v41 = vrot.slane %v311_v38, %v1011_v23  ;;  %vm955_vm2 = vmmov 0  }
  0x92   : > { %v363_v48 = vmul.bf16 %v361_v46, %v1009_v22  ;;  %v349_v49 = vmul.bf16 %v347_v47, %v1009_v22  ;;  %v365_v0 = vpop.permute.xlu0 %364  ;;  %v486_v2 = vrot.slane %v479_v60, %v1011_v23  ;;  %v422_v5 = vcombine.low %v414_v56, %v414_v56  ;;  %v400_v26 = vpop.permute.xlu1 %399 }
  0x93   : > { %v366_v4 = vrot.slane %v365_v0, 6  ;;  %v421_v8 = vrot.slane %v407_v1, %v1011_v23  ;;  %v379_v44 = vcombine.high %v378_v41, %v378_v41 }
  0x94   : > { %v434_v52 = vcombine.low %v349_v49, %v349_v49  ;;  %v512_v53 = vrot.slane %v363_v48, %v1011_v23  ;;  %v448_v57 = vrot.slane %v349_v49, %v1011_v23  ;;  %v505_v61 = vcombine.high %v363_v48, %v363_v48 }
  0x95   : > { %v368_v9 = vsel %vm367_vm4, %v366_v4, %v365_v0  ;;  %v423_v11 = vcombine.low %v421_v8, %v421_v8  ;;  %v494_v12 = vcombine.high %v486_v2, %v486_v2 }
  0x96   : > { %524 = vrot.lane.b32.xlu0 %v512_v53, %s947_s12  ;;  %v441_v55 = vrot.slane %v434_v52, %v1011_v23  ;;  %v450_v59 = vcombine.low %v448_v57, %v448_v57  ;;  %v520_v63 = vcombine.low %v512_v53, %v512_v53  ;;  %v519_v3 = vrot.slane %v505_v61, %v1011_v23  ;;  %v402_v25 = vpop.permute.xlu0 %401  ;;  %v398_v28 = vpop.permute.xlu1 %397 }
  0x97   : > { %v370_v10 = vmul.bf16 %v368_v9, %v1009_v22  ;;  %v404_v45 = vsel %vm403_vm5, %v398_v28, %v400_v26  ;;  %v405_v46 = vsel %vm403_vm5, %v400_v26, %v402_v25 }
  0x98   : > { %453 = vrot.lane.b32.xlu1 %v441_v55, %s948_s13  ;;  %v449_v62 = vcombine.low %v441_v55, %v441_v55  ;;  %v521_v6 = vcombine.low %v519_v3, %v519_v3  ;;  %v571_v22 = vsel %vm568_vm7, %v378_v41, %v404_v45 }
  0x99   : > { %v550_v13 = vrot.slane %v370_v10, %v1011_v23  ;;  %v543_v15 = vcombine.high %v370_v10, %v370_v10 }
  0x9a   : > { %426 = vrot.lane.b32.xlu0 %v414_v56, %s949_s14  ;;  %v472_v27 = vpop.permute.xlu0 %471 }
  0x9b   : > { %v557_v17 = vrot.slane %v543_v15, %v1011_v23  ;;  %v558_v18 = vcombine.high %v550_v13, %v550_v13  ;;  %v574_v23 = vsel %vm568_vm7, %v379_v44, %v405_v46  ;;  %v928_v15 = vld [vmem:[%s1125_s2] sm:$0xff]  }
  0x9c   : > { %499 = vrot.lane.b32.xlu1 %v493_v58, %s950_s15 }
  0x9e   : > { %455 = vrot.lane.b32.xlu0 %v450_v59, %s948_s13  ;;  %v470_v29 = vpop.permute.xlu0 %469 }
  0xa0   : > { %451 = vrot.lane.b32.xlu1 %v449_v62, %s948_s13 }
  0xa2   : > { %522 = vrot.lane.b32.xlu0 %v520_v63, %s947_s12  ;;  %v476_v63 = vsel %vm475_vm9, %v470_v29, %v472_v27 }
  0xa4   : > { %495 = vrot.lane.b32.xlu1 %v486_v2, %s950_s15 }
  0xa6   : > { %424 = vrot.lane.b32.xlu0 %v422_v5, %s949_s14 }
  0xa8   : > { %526 = vrot.lane.b32.xlu1 %v521_v6, %s947_s12 }
  0xaa   : > { %537 = vrot.lane.b32.xlu0 %v532_v7, %s951_s16 }
  0xac   : > { %428 = vrot.lane.b32.xlu1 %v423_v11, %s949_s14 }
  0xae   : > { %497 = vrot.lane.b32.xlu0 %v494_v12, %s950_s15  ;;  %s249_s15 = scalar_lea.vmem %s1129_s6, %s858_s10 }
  0xb0   : > { %535 = vrot.lane.b32.xlu1 %v1020_v31, %s951_s16  ;;  %v474_v31 = vpop.permute.xlu1 %473 }
  0xb1   : > { %v477_v51 = vsel %vm475_vm9, %v472_v27, %v474_v31 }
  0xb2   : > { %559 = vrot.lane.b32.xlu0 %v550_v13, %s953_s17 }
  0xb4   : > { %533 = vrot.lane.b32.xlu1 %v531_v16, %s951_s16  ;;  %v929_v16 = vld [vmem:[%s1125_s2 + $0x8] sm:$0xff]  }
  0xb6   : > { %563 = vrot.lane.b32.xlu0 %v557_v17, %s953_s17 }
  0xb8   : > { %561 = vrot.lane.b32.xlu1 %v558_v18, %s953_s17 }
  0xba   : > { %610 = vperm.xlu0 %925, %v257_v19  }
  0xbc   : > { %605 = vperm.xlu1 %924, %v256_v20  }
  0xc0   : > { %615 = vperm.xlu1 %924, %v258_v21  }
  0xc4   : > { %620 = vperm.xlu1 %924, %v259_v24  }
 0x108   : > { %v525_v32 = vpop.permute.xlu0 %524 }
 0x10a   : > { %v454_v33 = vpop.permute.xlu1 %453 }
 0x10c   : > { %v427_v34 = vpop.permute.xlu0 %426 }
 0x10e   : > { %v500_v35 = vpop.permute.xlu1 %499 }
 0x110   : > { %v456_v36 = vpop.permute.xlu0 %455 }
 0x111   : > { %v459_v52 = vsel %vm457_vm10, %v454_v33, %v456_v36 }
 0x112   : > { %v452_v37 = vpop.permute.xlu1 %451 }
 0x113   : > { %v458_v55 = vsel %vm457_vm10, %v452_v37, %v454_v33 }
 0x114   : > { %v523_v39 = vpop.permute.xlu0 %522 }
 0x115   : > { %v529_v5 = vsel %vm528_vm11, %v523_v39, %v525_v32 }
 0x116   : > { %v496_v40 = vpop.permute.xlu1 %495 }
 0x118   : > { %v425_v42 = vpop.permute.xlu0 %424 }
 0x119   : > { %v431_v47 = vsel %vm430_vm6, %v425_v42, %v427_v34 }
 0x11a   : > { %v527_v43 = vpop.permute.xlu1 %526  ;;  %v577_v50 = vsel %vm575_vm8, %v571_v22, %v431_v47 }
 0x11b   : > { %v530_v59 = vsel %vm528_vm11, %v525_v32, %v527_v43  ;;  %v582_v62 = vsel %vm580_vm13, %v577_v50, %v458_v55  ;;  %v956_v50 = vmov 0.0  }
 0x11c   : > { %v538_v48 = vpop.permute.xlu0 %537 }
 0x11e   : > { %v429_v30 = vpop.permute.xlu1 %428 }
 0x11f   : > { %v432_v49 = vsel %vm430_vm6, %v427_v34, %v429_v30 }
 0x120   : > { %v498_v53 = vpop.permute.xlu0 %497  ;;  %v579_v54 = vsel %vm575_vm8, %v574_v23, %v432_v49  ;;  %v954_v49 = vmov 0.0|0.0  }
 0x121   : > { %v502_v56 = vsel %vm501_vm12, %v496_v40, %v498_v53  ;;  %v503_v57 = vsel %vm501_vm12, %v498_v53, %v500_v35  ;;  %v585_v58 = vsel %vm580_vm13, %v579_v54, %v459_v52 }
 0x122   : > { %v592_v60 = vsel %vm568_vm7, %v477_v51, %v503_v57  ;;  %v536_v61 = vpop.permute.xlu1 %535  ;;  %646 = vmatprep.subr.bf16.mxu0 %v585_v58  ;;  %890 = vmatprep.subr.bf16.mxu1 %v585_v58  ;;  %v589_v2 = vsel %vm568_vm7, %v476_v63, %v502_v56 }
 0x123   : > { %v541_v0 = vsel %vm539_vm14, %v536_v61, %v538_v48  ;;  %647 = vmatpush1.bf16.msra.mxu0 %v582_v62  ;;  %893 = vmatpush1.bf16.msra.mxu1 %v582_v62  ;;  %v596_v1 = vsel %vm575_vm8, %v592_v60, %v530_v59  ;;  %v594_v8 = vsel %vm575_vm8, %v589_v2, %v529_v5  ;;  %v261_v62 = vld [vmem:[%s1128_s5] sm:$0xff] }
 0x124   : > { %v560_v3 = vpop.permute.xlu0 %559  ;;  %v601_v4 = vsel %vm580_vm13, %v596_v1, %v541_v0 }
 0x125   : > { %648 = vmatprep.subr.bf16.mxu0 %v601_v4  ;;  %891 = vmatprep.subr.bf16.mxu1 %v601_v4 }
 0x126   : > { %v534_v6 = vpop.permute.xlu1 %533 }
 0x127   : > { %v540_v7 = vsel %vm539_vm14, %v534_v6, %v536_v61  ;;  %v260_v61 = vld [vmem:[%s1127_s4] sm:$0xff] }
 0x128   : > { %v598_v9 = vsel %vm580_vm13, %v594_v8, %v540_v7  ;;  %v564_v10 = vpop.permute.xlu0 %563 }
 0x129   : > { %649 = vmatpush1.bf16.msra.mxu0 %v598_v9  ;;  %894 = vmatpush1.bf16.msra.mxu1 %v598_v9 }
 0x12a   : > { %v562_v11 = vpop.permute.xlu1 %561 }
 0x12b   : > { %v566_v12 = vsel %vm565_vm15, %v560_v3, %v562_v11  ;;  %v567_v13 = vsel %vm565_vm15, %v562_v11, %v564_v10 }
 0x12c   : > { %862 = vmatprep.subr.msk.bf16.mxu0 %vm568_vm7, %v567_v13  ;;  %892 = vmatprep.subr.msk.bf16.mxu1 %vm568_vm7, %v567_v13  ;;  %v641_v14 = vsel %vm568_vm7, %v566_v12, 0 }
 0x12d   : > { %651 = vmatpush1.bf16.msra.mxu0 %v641_v14  ;;  %895 = vmatpush1.bf16.msra.mxu1 %v641_v14 }
 0x12e   : > { %884 = vmatprep.subr.bf16.mxu1 %v954_v49 }
 0x130   : > { %863 = vmatmul.mubr.msk.bf16.vlgmr.msra.gmra.mrb[0].mxu0 %vm633_vm0, %v928_v15  ;;  %864 = vmatmul.mubr.msk.bf16.vlgmr.msra.gmra.mrb[0].mxu1 %vm633_vm0, %v929_v16 }
 0x131   : > { %881 = vmatprep.mubr.msk.f32.mxu1 %vm955_vm2, %v956_v50 }
 0x139   : > { %v611_v20 = vpop.permute.xlu0 %610 }
 0x13b   : > { %v606_v17 = vpop.permute.xlu1 %605 }
 0x13f   : > { %v616_v18 = vpop.permute.xlu1 %615 }
 0x143   : > { %v621_v19 = vpop.permute.xlu1 %620 }
 0x203   : > { %v680_v21 = vpop.f32.mrb[0].mxu0  ;;  %v690_v24 = vpop.f32.mrb[0].mxu1 }
 0x204   : > { %v681_v25 = vadd.f32 %v680_v21, %v606_v17  ;;  %v691_v26 = vadd.f32 %v690_v24, %v616_v18  ;;  %v682_v27 = vpop.f32.mrb[1].mxu0  ;;  %v692_v28 = vpop.f32.mrb[1].mxu1 }
 0x205   : > { %v683_v29 = vadd.f32 %v682_v27, %v606_v17  ;;  %v693_v31 = vadd.f32 %v692_v28, %v616_v18  ;;  %v684_v32 = vpop.f32.mrb[2].mxu0  ;;  %v694_v33 = vpop.f32.mrb[2].mxu1 }
 0x206   : > { %v699_v34 = vmax.f32 %v681_v25, 0.0  ;;  %v703_v35 = vmax.f32 %v691_v26, 0.0  ;;  %v685_v36 = vadd.f32 %v684_v32, %v611_v20  ;;  %v695_v37 = vadd.f32 %v694_v33, %v621_v19  ;;  %v686_v38 = vpop.f32.mrb[3].mxu0  ;;  %v696_v39 = vpop.f32.mrb[3].mxu1 }
 0x207   : > { %v700_v40 = vmax.f32 %v683_v29, 0.0  ;;  %v704_v41 = vmax.f32 %v693_v31, 0.0  ;;  %v687_v42 = vadd.f32 %v686_v38, %v611_v20  ;;  %v697_v43 = vadd.f32 %v696_v39, %v621_v19 }
 0x208   : > { %v701_v44 = vmax.f32 %v685_v36, 0.0  ;;  %v705_v45 = vmax.f32 %v695_v37, 0.0 }
 0x209   : > { %v702_v46 = vmax.f32 %v687_v42, 0.0  ;;  %v706_v47 = vmax.f32 %v697_v43, 0.0  ;;  %v707_v48 = vadd.f32 %v700_v40, %v699_v34  ;;  %v713_v22 = vadd.f32 %v704_v41, %v703_v35 }
 0x20b   : > { %708 = vadd.xlane.f32.xlu0 %v707_v48  ;;  %v710_v30 = vadd.f32 %v702_v46, %v701_v44  ;;  %v716_v23 = vadd.f32 %v706_v47, %v705_v45 }
 0x20d   : > { %711 = vadd.xlane.f32.xlu1 %v710_v30 }
 0x20f   : > { %714 = vadd.xlane.f32.xlu0 %v713_v22 }
 0x213   : > { %717 = vadd.xlane.f32.xlu0 %v716_v23 }
 0x298   : > { %v709_v51 = vpop.xlane.xlu0 %708 }
 0x299   : > { %v719_v53 = vmul.f32 0.00390625, %v709_v51 }
 0x29a   : > { %v712_v52 = vpop.xlane.xlu1 %711 }
 0x29b   : > { %v720_v54 = vmul.f32 0.00390625, %v712_v52 }
 0x29c   : > { %v715_v55 = vpop.xlane.xlu0 %714 }
 0x29d   : > { %v885_v56 = vpack.c.bf16 %v720_v54, %v719_v53  ;;  %v721_v58 = vmul.f32 0.00390625, %v715_v55 }
 0x29f   : > { %886 = vmatpush3.bf16.msra.mxu1 %v885_v56 }
 0x2a0   : > { %v718_v57 = vpop.xlane.xlu0 %717  ;;  %887 = vmatprep.subr.bf16.mxu1 %v954_v49 }
 0x2a1   : > { %v722_v59 = vmul.f32 0.00390625, %v718_v57 }
 0x2a3   : > { %v888_v60 = vpack.c.bf16 %v722_v59, %v721_v58 }
 0x2a5   : > { %889 = vmatpush3.bf16.msra.mxu1 %v888_v60 }
 0x2a8   : > { %882 = vmatmul.mubr.msk.f32.vlgmr.msra.gmra.mrb[4].mxu1 %vm360_vm1, %v260_v61 }
 0x37b   : > { %v793_v63 = vpop.f32.mrb[4].mxu1 }
 0x37c   : > { %v794_v0 = vadd.f32 %v793_v63, %v261_v62  ;;  %v883_v1 = vpop.f32.mrb[5].mxu1 }
 0x37e   : > { %798 = vst.msk [vmem:[%s249_s15] sm:$0xff] %vm797_vm3, %v794_v0 }
 0x37f PF: > { %s16_s21 = sadd.s32 1, %s936_s21  }
 0x380   : > { %p13_p4 = scmp.ge.s32.totalorder %s16_s21, 4  }
 0x382   :  { %15 = sbr.rel (!%p13_p4) target bundleno = 1 (0x1), region = 74 }

</bundles_post_ra>
